<compile_context>
chip_gen: v5e
topology: v5e:2x2
jax: 0.10.0
libtpu: 0.0.40
codegen_flags: <defaults>
</compile_context>

<pallas_src>
import math
import jax
import jax.numpy as jnp
from jax.experimental import pallas as pl
from jax.experimental.pallas import tpu as pltpu

# ----------------------------- problem sizes --------------------------------
B = 2          # batch
C = 4          # latent channels (NCHW)
H = W = 16     # latent spatial
S = H * W      # flattened spatial sequence (256 -> two full 128-lane tiles)
L_TXT = 8      # text token count
N_IP = 4       # clip_extra_context_tokens
L_CTX = L_TXT + N_IP
D = 32         # cross_attention_dim (= hidden dim of the attention block)
CLIP = 32      # clip_embeddings_dim
IP_SCALE = 1.0
LN_EPS = 1e-5

# constant-slab row offsets (all slice starts are 8-sublane aligned)
_WK, _WV, _WKI, _WVI, _WOOUT, _BKI, _BVI = 0, 32, 64, 96, 128, 136, 144
_WKV_ROWS = 152


# ------------------------- fused forward kernel -----------------------------
def ip_adapter_block_kernel(x_ref, tok_ref, wmix_ref, wkv_ref, wproj_ref, o_ref):
    f32 = jnp.float32

    # ---- ImageProjModel: Linear -> LayerNorm (gamma/beta folded into ip K/V) ----
    emb = tok_ref[B * L_TXT:B * L_TXT + B, :]                               # (2, 32)
    proj = (jnp.dot(emb, wproj_ref[0:CLIP, :], preferred_element_type=f32)
            + wproj_ref[CLIP:CLIP + 1, :])                                  # (2, 128), b_proj row
    t = proj.reshape(B, N_IP, D)
    mu = jnp.mean(t, axis=-1, keepdims=True)
    cen = t - mu
    var = jnp.mean(cen * cen, axis=-1, keepdims=True)                       # stable two-pass variance
    norm = (cen * jax.lax.rsqrt(var + LN_EPS)).reshape(B * N_IP, D)         # (8, 32)

    txt = tok_ref[0:B * L_TXT, :]                                           # (16, 32)

    # ---- K/V token projections, batched over both batch elements ----
    k_txt = jnp.dot(txt, wkv_ref[_WK:_WK + D, :], preferred_element_type=f32)      # (16, 32)
    v_txt = jnp.dot(txt, wkv_ref[_WV:_WV + D, :], preferred_element_type=f32)      # (16, 32)
    k_ip = (jnp.dot(norm, wkv_ref[_WKI:_WKI + D, :], preferred_element_type=f32)
            + wkv_ref[_BKI:_BKI + 1, :])                                    # (8, 32), LN gamma/beta folded
    v_ip = (jnp.dot(norm, wkv_ref[_WVI:_WVI + D, :], preferred_element_type=f32)
            + wkv_ref[_BVI:_BVI + 1, :])                                    # (8, 32), ip_scale folded
    wo_out_t = wkv_ref[_WOOUT:_WOOUT + C, :]                                # (4, 32) = (Wo @ Wout)^T

    # ---- q / residual projection, batched over B*S; hb never materialized.
    #      Per-batch (b_in + temb) biases enter via indicator rows of x_aug and
    #      bias columns of wmix (assembled per call in the wrapper).
    qres = jnp.dot(wmix_ref[...], x_ref[...], preferred_element_type=f32)   # (36, 512)
    q_all = qres[0:D, :]                                                    # (32, 512), 1/sqrt(D) folded
    res_all = qres[D:D + C, :]                                              # (4, 512), x@Win@Wout + bias + b_out

    def softmax_keys(s):  # softmax over the key axis (axis 0) of an (L, S) tile
        m = jnp.max(s, axis=0, keepdims=True)
        e = jnp.exp(s - m)
        return e * pl.reciprocal(jnp.sum(e, axis=0, keepdims=True), approx=True)

    dn = (((0,), (0,)), ((), ()))    # contract dim 0 of both operands: V^T @ A, no explicit transpose
    attn_parts = []
    for b in range(B):               # B = 2 static unroll (per-batch live set is now small)
        qb = q_all[:, b * S:(b + 1) * S]                                    # (32, 256)
        s_t = jnp.dot(k_txt[b * L_TXT:(b + 1) * L_TXT, :], qb,
                      preferred_element_type=f32)                           # (8, 256)
        s_i = jnp.dot(k_ip[b * N_IP:(b + 1) * N_IP, :], qb,
                      preferred_element_type=f32)                           # (4, 256)
        a_t = softmax_keys(s_t)                                             # text / ip keys use
        a_i = softmax_keys(s_i)                                             # separate softmaxes
        attn_t = (jax.lax.dot_general(v_txt[b * L_TXT:(b + 1) * L_TXT, :], a_t, dn,
                                      preferred_element_type=f32)
                  + jax.lax.dot_general(v_ip[b * N_IP:(b + 1) * N_IP, :], a_i, dn,
                                        preferred_element_type=f32))        # (32, 256)
        attn_parts.append(attn_t)

    attn_all = jnp.concatenate(attn_parts, axis=1)                          # (32, 512), lane-tile aligned
    noise_all = res_all + jnp.dot(wo_out_t, attn_all, preferred_element_type=f32)   # (4, 512)

    # single dense (B*C, S) = (8, 256) store: rows [b0c0..b0c3, b1c0..b1c3]
    o_ref[...] = jnp.concatenate([noise_all[:, 0:S], noise_all[:, S:2 * S]],
                                 axis=0).astype(o_ref.dtype)


# -------------------- trace-time weight preparation (once) ------------------
def prepare_params(p):
    """One-time constant folding / slab packing for the fused kernel."""
    scale = 1.0 / math.sqrt(D)
    wq_s = p["wq"] * scale                                    # 1/sqrt(D) folded into Wq
    wq_in_t = (p["w_in"] @ wq_s).T                            # (D, C)  — Win folded into q path
    w_outin_t = (p["w_in"] @ p["w_out"]).T                    # (C, C)  — Win folded into out path
    wmix_w = jnp.concatenate([wq_in_t, w_outin_t], axis=0)    # (D+C, C) = (36, 4)

    g_col = p["ln_g"].reshape(D, 1)                           # LN gamma folded into ip K/V weights
    wkv = jnp.zeros((_WKV_ROWS, D), jnp.float32)
    wkv = wkv.at[_WK:_WK + D].set(p["wk"])
    wkv = wkv.at[_WV:_WV + D].set(p["wv"])
    wkv = wkv.at[_WKI:_WKI + D].set(g_col * p["wk_ip"])
    wkv = wkv.at[_WVI:_WVI + D].set(IP_SCALE * (g_col * p["wv_ip"]))      # ip_scale folded
    wkv = wkv.at[_WOOUT:_WOOUT + C].set((p["wo"] @ p["w_out"]).T)         # (C, D): Wo @ Wout folded
    wkv = wkv.at[_BKI:_BKI + 1].set(p["ln_b"] @ p["wk_ip"])               # LN beta folded (additive)
    wkv = wkv.at[_BVI:_BVI + 1].set(IP_SCALE * (p["ln_b"] @ p["wv_ip"]))

    wproj = jnp.concatenate([p["w_proj"], p["b_proj"]], axis=0)           # (CLIP+1, N_IP*D) = (33, 128)

    return {
        # per-call bias assembly needs these (tiny, handled by XLA in the wrapper)
        "wq_s": wq_s, "w_out": p["w_out"], "b_out": p["b_out"], "b_in": p["b_in"],
        "w_t": p["w_t"], "b_t": p["b_t"],
        # packed kernel operands
        "wmix_w": wmix_w, "wkv": wkv, "wproj": wproj,
    }


# ------------------------------- wrapper -------------------------------------
def ip_adapter_forward(noisy_latents, timesteps, encoder_hidden_states,
                       image_embeds, prepared):
    f32 = jnp.float32
    # Timestep embedding (sinusoidal + linear) — tiny, left to XLA; folded into the
    # per-batch bias columns of wmix.  [cos, sin] matches flip_sin_to_cos=True.
    half = D // 2
    freqs = jnp.exp(-math.log(10000.0) * jnp.arange(half, dtype=f32) / half)
    ang = timesteps.astype(f32)[:, None] * freqs[None, :]
    temb = jnp.concatenate([jnp.cos(ang), jnp.sin(ang)], axis=-1)          # (B, D)
    temb = temb @ prepared["w_t"] + prepared["b_t"]
    bias_h = prepared["b_in"] + temb                                       # (B, D) = b_in + temb
    bias_q = bias_h @ prepared["wq_s"]                                     # (B, D) — q-path bias
    bias_o = bias_h @ prepared["w_out"] + prepared["b_out"]                # (B, C) — out-path bias
    bias_cols = jnp.concatenate([bias_q.T, bias_o.T], axis=0)              # (36, 2)
    wmix = jnp.concatenate([prepared["wmix_w"], bias_cols], axis=1)        # (36, 6)

    # x in channels-first, batched over B*S; indicator rows select the per-batch bias column.
    x = noisy_latents.reshape(B, C, S).transpose(1, 0, 2).reshape(C, B * S)        # (4, 512)
    ind = (jnp.arange(B * S)[None, :] // S == jnp.arange(B)[:, None]).astype(f32)  # (2, 512)
    x_aug = jnp.concatenate([x, ind], axis=0)                                      # (6, 512)

    # text tokens + clip embeds packed into one (18, 32) slab
    tok = jnp.concatenate([encoder_hidden_states.reshape(B * L_TXT, D),
                           image_embeds], axis=0)

    vmem = pl.BlockSpec(memory_space=pltpu.MemorySpace.VMEM)
    noise = pl.pallas_call(
        ip_adapter_block_kernel,
        out_shape=jax.ShapeDtypeStruct((B * C, S), f32),
        in_specs=[vmem] * 5,
        out_specs=vmem,
    )(x_aug, tok, wmix, prepared["wkv"], prepared["wproj"])

    return noise.reshape(B, C, H, W)      # (B*C, S) -> NCHW: pure reshape


# --------------------------- pure-JAX reference -------------------------------
def reference_forward(noisy_latents, timesteps, encoder_hidden_states,
                      image_embeds, p):
    """Unfolded reference with the original parameterization (validates folding)."""
    # ImageProjModel
    proj = image_embeds @ p["w_proj"] + p["b_proj"]
    t = proj.reshape(B, N_IP, D)
    mu = t.mean(-1, keepdims=True)
    var = ((t - mu) ** 2).mean(-1, keepdims=True)
    ip = (t - mu) / jnp.sqrt(var + LN_EPS) * p["ln_g"] + p["ln_b"]
    ctx = jnp.concatenate([encoder_hidden_states, ip], axis=1)             # (B, L_CTX, D)

    # timestep embedding ([cos, sin])
    half = D // 2
    freqs = jnp.exp(-math.log(10000.0) * jnp.arange(half, dtype=jnp.float32) / half)
    ang = timesteps.astype(jnp.float32)[:, None] * freqs[None, :]
    temb = jnp.concatenate([jnp.cos(ang), jnp.sin(ang)], axis=-1) @ p["w_t"] + p["b_t"]

    # UNet cross-attention block (IPAttnProcessor)
    x = noisy_latents.reshape(B, C, S).transpose(0, 2, 1)                  # (B, S, C)
    h = x @ p["w_in"] + p["b_in"] + temb[:, None, :]
    q = h @ p["wq"]
    txt, ipc = ctx[:, :L_TXT], ctx[:, L_TXT:]
    k, v = txt @ p["wk"], txt @ p["wv"]
    k_ip, v_ip = ipc @ p["wk_ip"], ipc @ p["wv_ip"]
    sc = 1.0 / math.sqrt(D)
    a1 = jax.nn.softmax(jnp.einsum("bsd,bld->bsl", q, k) * sc, axis=-1)
    a2 = jax.nn.softmax(jnp.einsum("bsd,bld->bsl", q, k_ip) * sc, axis=-1)
    attn = (jnp.einsum("bsl,bld->bsd", a1, v)
            + IP_SCALE * jnp.einsum("bsl,bld->bsd", a2, v_ip))
    h = h + attn @ p["wo"]
    noise = h @ p["w_out"] + p["b_out"]
    return noise.transpose(0, 2, 1).reshape(B, C, H, W)


# --------------------------- deterministic init -------------------------------
def make_params(key):
    ks = jax.random.split(key, 16)
    g = lambda k, shape, s: jax.random.normal(k, shape, jnp.float32) * s
    return {
        # ImageProjModel: Linear(CLIP -> N_IP*D) + LayerNorm(D)
        "w_proj": g(ks[0], (CLIP, N_IP * D), 0.02),
        "b_proj": g(ks[1], (1, N_IP * D), 0.02),
        "ln_g": 1.0 + g(ks[2], (1, D), 0.02),
        "ln_b": g(ks[3], (1, D), 0.02),
        # timestep MLP
        "w_t": g(ks[4], (D, D), 0.02),
        "b_t": g(ks[5], (D,), 0.02),
        # UNet block: 1x1 conv in/out + IP cross-attention
        "w_in": g(ks[6], (C, D), 0.1),
        "b_in": g(ks[7], (1, D), 0.02),
        "wq": g(ks[8], (D, D), 0.05),
        "wk": g(ks[9], (D, D), 0.05),
        "wv": g(ks[10], (D, D), 0.05),
        "wk_ip": g(ks[11], (D, D), 0.05),   # adapter_modules: to_k_ip
        "wv_ip": g(ks[12], (D, D), 0.05),   # adapter_modules: to_v_ip
        "wo": g(ks[13], (D, D), 0.05),
        "w_out": g(ks[14], (D, C), 0.1),
        "b_out": g(ks[15], (1, C), 0.02),
    }


if __name__ == "__main__":
    key = jax.random.PRNGKey(0)
    k1, k2, k3, k4, kp = jax.random.split(key, 5)

    noisy_latents = jax.random.normal(k1, (B, C, H, W), jnp.float32)    # NCHW
    timesteps = jax.random.randint(k2, (B,), 0, 1000).astype(jnp.int32)
    encoder_hidden_states = jax.random.normal(k3, (B, L_TXT, D), jnp.float32)
    image_embeds = jax.random.normal(k4, (B, CLIP), jnp.float32)

    params = make_params(kp)
    prepared = prepare_params(params)     # one-time constant folding / slab packing

    fwd = jax.jit(ip_adapter_forward)
    noise_pred = jax.block_until_ready(
        fwd(noisy_latents, timesteps, encoder_hidden_states, image_embeds, prepared))

    assert noise_pred.shape == (B, C, H, W)
    assert bool(jnp.all(jnp.isfinite(noise_pred)))

    ref = reference_forward(noisy_latents, timesteps, encoder_hidden_states,
                            image_embeds, params)
    max_err = float(jnp.max(jnp.abs(noise_pred - ref)))
    assert bool(jnp.allclose(noise_pred, ref, rtol=1e-2, atol=1e-3)), max_err

    print("KERNEL_OK")
</pallas_src>

<mosaic_0001>
module attributes {stable_mosaic.version = 11 : i64} {
  func.func @ip_adapter_block_kernel(%arg0: memref<6x512xf32, #tpu.memory_space<vmem>>, %arg1: memref<18x32xf32, #tpu.memory_space<vmem>>, %arg2: memref<36x6xf32, #tpu.memory_space<vmem>>, %arg3: memref<152x32xf32, #tpu.memory_space<vmem>>, %arg4: memref<33x128xf32, #tpu.memory_space<vmem>>, %arg5: memref<8x256xf32, #tpu.memory_space<vmem>>) attributes {dimension_semantics = [], scalar_prefetch = 0 : i64, scratch_operands = 0 : i64, tpu.core_type = #tpu.core_type<tc>} {
    %c16 = arith.constant 16 : index
    %c0 = arith.constant 0 : index
    %0 = vector.load %arg1[%c16, %c0] : memref<18x32xf32, #tpu.memory_space<vmem>>, vector<2x32xf32>
    %c0_0 = arith.constant 0 : index
    %c0_1 = arith.constant 0 : index
    %1 = vector.load %arg4[%c0_0, %c0_1] : memref<33x128xf32, #tpu.memory_space<vmem>>, vector<32x128xf32>
    %cst = arith.constant dense<0.000000e+00> : vector<2x128xf32>
    %2 = tpu.matmul %0, %1, %cst {dimension_numbers = #tpu.dot_dimension_numbers<[1], [0], [0], [1], [0, 0, 1, 1], [], []>} : vector<2x32xf32>, vector<32x128xf32>, vector<2x128xf32> -> vector<2x128xf32>
    %c32 = arith.constant 32 : index
    %c0_2 = arith.constant 0 : index
    %3 = vector.load %arg4[%c32, %c0_2] : memref<33x128xf32, #tpu.memory_space<vmem>>, vector<1x128xf32>
    %4 = vector.broadcast %3 : vector<1x128xf32> to vector<2x128xf32>
    %5 = arith.addf %2, %4 : vector<2x128xf32>
    %6 = vector.shape_cast %5 : vector<2x128xf32> to vector<2x4x32xf32>
    %cst_3 = arith.constant dense<0.000000e+00> : vector<2x4xf32>
    %7 = vector.multi_reduction <add>, %6, %cst_3 [2] : vector<2x4x32xf32> to vector<2x4xf32>
    %8 = vector.shape_cast %7 : vector<2x4xf32> to vector<2x4x1xf32>
    %cst_4 = arith.constant 3.200000e+01 : f32
    %9 = vector.broadcast %cst_4 : f32 to vector<2x4x1xf32>
    %10 = arith.divf %8, %9 : vector<2x4x1xf32>
    %11 = vector.broadcast %10 : vector<2x4x1xf32> to vector<2x4x32xf32>
    %12 = arith.subf %6, %11 : vector<2x4x32xf32>
    %13 = arith.mulf %12, %12 : vector<2x4x32xf32>
    %cst_5 = arith.constant dense<0.000000e+00> : vector<2x4xf32>
    %14 = vector.multi_reduction <add>, %13, %cst_5 [2] : vector<2x4x32xf32> to vector<2x4xf32>
    %15 = vector.shape_cast %14 : vector<2x4xf32> to vector<2x4x1xf32>
    %cst_6 = arith.constant 3.200000e+01 : f32
    %16 = vector.broadcast %cst_6 : f32 to vector<2x4x1xf32>
    %17 = arith.divf %15, %16 : vector<2x4x1xf32>
    %cst_7 = arith.constant 9.99999974E-6 : f32
    %18 = vector.broadcast %cst_7 : f32 to vector<2x4x1xf32>
    %19 = arith.addf %17, %18 : vector<2x4x1xf32>
    %20 = math.rsqrt %19 : vector<2x4x1xf32>
    %21 = vector.broadcast %20 : vector<2x4x1xf32> to vector<2x4x32xf32>
    %22 = arith.mulf %12, %21 : vector<2x4x32xf32>
    %23 = vector.shape_cast %22 : vector<2x4x32xf32> to vector<8x32xf32>
    %c0_8 = arith.constant 0 : index
    %c0_9 = arith.constant 0 : index
    %24 = vector.load %arg1[%c0_8, %c0_9] : memref<18x32xf32, #tpu.memory_space<vmem>>, vector<16x32xf32>
    %c0_10 = arith.constant 0 : index
    %c0_11 = arith.constant 0 : index
    %25 = vector.load %arg3[%c0_10, %c0_11] : memref<152x32xf32, #tpu.memory_space<vmem>>, vector<32x32xf32>
    %cst_12 = arith.constant dense<0.000000e+00> : vector<16x32xf32>
    %26 = tpu.matmul %24, %25, %cst_12 {dimension_numbers = #tpu.dot_dimension_numbers<[1], [0], [0], [1], [0, 0, 1, 1], [], []>} : vector<16x32xf32>, vector<32x32xf32>, vector<16x32xf32> -> vector<16x32xf32>
    %c32_13 = arith.constant 32 : index
    %c0_14 = arith.constant 0 : index
    %27 = vector.load %arg3[%c32_13, %c0_14] : memref<152x32xf32, #tpu.memory_space<vmem>>, vector<32x32xf32>
    %cst_15 = arith.constant dense<0.000000e+00> : vector<16x32xf32>
    %28 = tpu.matmul %24, %27, %cst_15 {dimension_numbers = #tpu.dot_dimension_numbers<[1], [0], [0], [1], [0, 0, 1, 1], [], []>} : vector<16x32xf32>, vector<32x32xf32>, vector<16x32xf32> -> vector<16x32xf32>
    %c64 = arith.constant 64 : index
    %c0_16 = arith.constant 0 : index
    %29 = vector.load %arg3[%c64, %c0_16] : memref<152x32xf32, #tpu.memory_space<vmem>>, vector<32x32xf32>
    %cst_17 = arith.constant dense<0.000000e+00> : vector<8x32xf32>
    %30 = tpu.matmul %23, %29, %cst_17 {dimension_numbers = #tpu.dot_dimension_numbers<[1], [0], [0], [1], [0, 0, 1, 1], [], []>} : vector<8x32xf32>, vector<32x32xf32>, vector<8x32xf32> -> vector<8x32xf32>
    %c136 = arith.constant 136 : index
    %c0_18 = arith.constant 0 : index
    %31 = vector.load %arg3[%c136, %c0_18] : memref<152x32xf32, #tpu.memory_space<vmem>>, vector<1x32xf32>
    %32 = vector.broadcast %31 : vector<1x32xf32> to vector<8x32xf32>
    %33 = arith.addf %30, %32 : vector<8x32xf32>
    %c96 = arith.constant 96 : index
    %c0_19 = arith.constant 0 : index
    %34 = vector.load %arg3[%c96, %c0_19] : memref<152x32xf32, #tpu.memory_space<vmem>>, vector<32x32xf32>
    %cst_20 = arith.constant dense<0.000000e+00> : vector<8x32xf32>
    %35 = tpu.matmul %23, %34, %cst_20 {dimension_numbers = #tpu.dot_dimension_numbers<[1], [0], [0], [1], [0, 0, 1, 1], [], []>} : vector<8x32xf32>, vector<32x32xf32>, vector<8x32xf32> -> vector<8x32xf32>
    %c144 = arith.constant 144 : index
    %c0_21 = arith.constant 0 : index
    %36 = vector.load %arg3[%c144, %c0_21] : memref<152x32xf32, #tpu.memory_space<vmem>>, vector<1x32xf32>
    %37 = vector.broadcast %36 : vector<1x32xf32> to vector<8x32xf32>
    %38 = arith.addf %35, %37 : vector<8x32xf32>
    %c128 = arith.constant 128 : index
    %c0_22 = arith.constant 0 : index
    %39 = vector.load %arg3[%c128, %c0_22] : memref<152x32xf32, #tpu.memory_space<vmem>>, vector<4x32xf32>
    %c0_23 = arith.constant 0 : index
    %c0_24 = arith.constant 0 : index
    %40 = vector.load %arg2[%c0_23, %c0_24] : memref<36x6xf32, #tpu.memory_space<vmem>>, vector<36x6xf32>
    %c0_25 = arith.constant 0 : index
    %c0_26 = arith.constant 0 : index
    %41 = vector.load %arg0[%c0_25, %c0_26] : memref<6x512xf32, #tpu.memory_space<vmem>>, vector<6x512xf32>
    %cst_27 = arith.constant dense<0.000000e+00> : vector<36x512xf32>
    %42 = tpu.matmul %40, %41, %cst_27 {dimension_numbers = #tpu.dot_dimension_numbers<[1], [0], [0], [1], [0, 0, 1, 1], [], []>} : vector<36x6xf32>, vector<6x512xf32>, vector<36x512xf32> -> vector<36x512xf32>
    %43 = vector.extract_strided_slice %42 {offsets = [0, 0], sizes = [32, 512], strides = [1, 1]} : vector<36x512xf32> to vector<32x512xf32>
    %44 = vector.extract_strided_slice %42 {offsets = [32, 0], sizes = [4, 512], strides = [1, 1]} : vector<36x512xf32> to vector<4x512xf32>
    %45 = vector.extract_strided_slice %43 {offsets = [0, 0], sizes = [32, 256], strides = [1, 1]} : vector<32x512xf32> to vector<32x256xf32>
    %46 = vector.extract_strided_slice %26 {offsets = [0, 0], sizes = [8, 32], strides = [1, 1]} : vector<16x32xf32> to vector<8x32xf32>
    %cst_28 = arith.constant dense<0.000000e+00> : vector<8x256xf32>
    %47 = tpu.matmul %46, %45, %cst_28 {dimension_numbers = #tpu.dot_dimension_numbers<[1], [0], [0], [1], [0, 0, 1, 1], [], []>} : vector<8x32xf32>, vector<32x256xf32>, vector<8x256xf32> -> vector<8x256xf32>
    %48 = vector.extract_strided_slice %33 {offsets = [0, 0], sizes = [4, 32], strides = [1, 1]} : vector<8x32xf32> to vector<4x32xf32>
    %cst_29 = arith.constant dense<0.000000e+00> : vector<4x256xf32>
    %49 = tpu.matmul %48, %45, %cst_29 {dimension_numbers = #tpu.dot_dimension_numbers<[1], [0], [0], [1], [0, 0, 1, 1], [], []>} : vector<4x32xf32>, vector<32x256xf32>, vector<4x256xf32> -> vector<4x256xf32>
    %cst_30 = arith.constant dense<0xFF800000> : vector<256xf32>
    %50 = vector.multi_reduction <maximumf>, %47, %cst_30 [0] : vector<8x256xf32> to vector<256xf32>
    %51 = vector.shape_cast %50 : vector<256xf32> to vector<1x256xf32>
    %52 = vector.broadcast %51 : vector<1x256xf32> to vector<8x256xf32>
    %53 = arith.subf %47, %52 : vector<8x256xf32>
    %54 = math.exp %53 : vector<8x256xf32>
    %cst_31 = arith.constant dense<0.000000e+00> : vector<256xf32>
    %55 = vector.multi_reduction <add>, %54, %cst_31 [0] : vector<8x256xf32> to vector<256xf32>
    %56 = vector.shape_cast %55 : vector<256xf32> to vector<1x256xf32>
    %57 = tpu.reciprocal %56 {approx = true} : vector<1x256xf32> -> vector<1x256xf32>
    %58 = vector.broadcast %57 : vector<1x256xf32> to vector<8x256xf32>
    %59 = arith.mulf %54, %58 : vector<8x256xf32>
    %cst_32 = arith.constant dense<0xFF800000> : vector<256xf32>
    %60 = vector.multi_reduction <maximumf>, %49, %cst_32 [0] : vector<4x256xf32> to vector<256xf32>
    %61 = vector.shape_cast %60 : vector<256xf32> to vector<1x256xf32>
    %62 = vector.broadcast %61 : vector<1x256xf32> to vector<4x256xf32>
    %63 = arith.subf %49, %62 : vector<4x256xf32>
    %64 = math.exp %63 : vector<4x256xf32>
    %cst_33 = arith.constant dense<0.000000e+00> : vector<256xf32>
    %65 = vector.multi_reduction <add>, %64, %cst_33 [0] : vector<4x256xf32> to vector<256xf32>
    %66 = vector.shape_cast %65 : vector<256xf32> to vector<1x256xf32>
    %67 = tpu.reciprocal %66 {approx = true} : vector<1x256xf32> -> vector<1x256xf32>
    %68 = vector.broadcast %67 : vector<1x256xf32> to vector<4x256xf32>
    %69 = arith.mulf %64, %68 : vector<4x256xf32>
    %70 = vector.extract_strided_slice %28 {offsets = [0, 0], sizes = [8, 32], strides = [1, 1]} : vector<16x32xf32> to vector<8x32xf32>
    %cst_34 = arith.constant dense<0.000000e+00> : vector<32x256xf32>
    %71 = tpu.matmul %70, %59, %cst_34 {dimension_numbers = #tpu.dot_dimension_numbers<[0], [0], [1], [1], [0, 1, 1, 1], [], []>} : vector<8x32xf32>, vector<8x256xf32>, vector<32x256xf32> -> vector<32x256xf32>
    %72 = vector.extract_strided_slice %38 {offsets = [0, 0], sizes = [4, 32], strides = [1, 1]} : vector<8x32xf32> to vector<4x32xf32>
    %cst_35 = arith.constant dense<0.000000e+00> : vector<32x256xf32>
    %73 = tpu.matmul %72, %69, %cst_35 {dimension_numbers = #tpu.dot_dimension_numbers<[0], [0], [1], [1], [0, 1, 1, 1], [], []>} : vector<4x32xf32>, vector<4x256xf32>, vector<32x256xf32> -> vector<32x256xf32>
    %74 = arith.addf %71, %73 : vector<32x256xf32>
    %75 = vector.extract_strided_slice %43 {offsets = [0, 256], sizes = [32, 256], strides = [1, 1]} : vector<32x512xf32> to vector<32x256xf32>
    %76 = vector.extract_strided_slice %26 {offsets = [8, 0], sizes = [8, 32], strides = [1, 1]} : vector<16x32xf32> to vector<8x32xf32>
    %cst_36 = arith.constant dense<0.000000e+00> : vector<8x256xf32>
    %77 = tpu.matmul %76, %75, %cst_36 {dimension_numbers = #tpu.dot_dimension_numbers<[1], [0], [0], [1], [0, 0, 1, 1], [], []>} : vector<8x32xf32>, vector<32x256xf32>, vector<8x256xf32> -> vector<8x256xf32>
    %78 = vector.extract_strided_slice %33 {offsets = [4, 0], sizes = [4, 32], strides = [1, 1]} : vector<8x32xf32> to vector<4x32xf32>
    %cst_37 = arith.constant dense<0.000000e+00> : vector<4x256xf32>
    %79 = tpu.matmul %78, %75, %cst_37 {dimension_numbers = #tpu.dot_dimension_numbers<[1], [0], [0], [1], [0, 0, 1, 1], [], []>} : vector<4x32xf32>, vector<32x256xf32>, vector<4x256xf32> -> vector<4x256xf32>
    %cst_38 = arith.constant dense<0xFF800000> : vector<256xf32>
    %80 = vector.multi_reduction <maximumf>, %77, %cst_38 [0] : vector<8x256xf32> to vector<256xf32>
    %81 = vector.shape_cast %80 : vector<256xf32> to vector<1x256xf32>
    %82 = vector.broadcast %81 : vector<1x256xf32> to vector<8x256xf32>
    %83 = arith.subf %77, %82 : vector<8x256xf32>
    %84 = math.exp %83 : vector<8x256xf32>
    %cst_39 = arith.constant dense<0.000000e+00> : vector<256xf32>
    %85 = vector.multi_reduction <add>, %84, %cst_39 [0] : vector<8x256xf32> to vector<256xf32>
    %86 = vector.shape_cast %85 : vector<256xf32> to vector<1x256xf32>
    %87 = tpu.reciprocal %86 {approx = true} : vector<1x256xf32> -> vector<1x256xf32>
    %88 = vector.broadcast %87 : vector<1x256xf32> to vector<8x256xf32>
    %89 = arith.mulf %84, %88 : vector<8x256xf32>
    %cst_40 = arith.constant dense<0xFF800000> : vector<256xf32>
    %90 = vector.multi_reduction <maximumf>, %79, %cst_40 [0] : vector<4x256xf32> to vector<256xf32>
    %91 = vector.shape_cast %90 : vector<256xf32> to vector<1x256xf32>
    %92 = vector.broadcast %91 : vector<1x256xf32> to vector<4x256xf32>
    %93 = arith.subf %79, %92 : vector<4x256xf32>
    %94 = math.exp %93 : vector<4x256xf32>
    %cst_41 = arith.constant dense<0.000000e+00> : vector<256xf32>
    %95 = vector.multi_reduction <add>, %94, %cst_41 [0] : vector<4x256xf32> to vector<256xf32>
    %96 = vector.shape_cast %95 : vector<256xf32> to vector<1x256xf32>
    %97 = tpu.reciprocal %96 {approx = true} : vector<1x256xf32> -> vector<1x256xf32>
    %98 = vector.broadcast %97 : vector<1x256xf32> to vector<4x256xf32>
    %99 = arith.mulf %94, %98 : vector<4x256xf32>
    %100 = vector.extract_strided_slice %28 {offsets = [8, 0], sizes = [8, 32], strides = [1, 1]} : vector<16x32xf32> to vector<8x32xf32>
    %cst_42 = arith.constant dense<0.000000e+00> : vector<32x256xf32>
    %101 = tpu.matmul %100, %89, %cst_42 {dimension_numbers = #tpu.dot_dimension_numbers<[0], [0], [1], [1], [0, 1, 1, 1], [], []>} : vector<8x32xf32>, vector<8x256xf32>, vector<32x256xf32> -> vector<32x256xf32>
    %102 = vector.extract_strided_slice %38 {offsets = [4, 0], sizes = [4, 32], strides = [1, 1]} : vector<8x32xf32> to vector<4x32xf32>
    %cst_43 = arith.constant dense<0.000000e+00> : vector<32x256xf32>
    %103 = tpu.matmul %102, %99, %cst_43 {dimension_numbers = #tpu.dot_dimension_numbers<[0], [0], [1], [1], [0, 1, 1, 1], [], []>} : vector<4x32xf32>, vector<4x256xf32>, vector<32x256xf32> -> vector<32x256xf32>
    %104 = arith.addf %101, %103 : vector<32x256xf32>
    %105 = tpu.concatenate %74, %104 in 1 : vector<32x256xf32>, vector<32x256xf32> -> vector<32x512xf32>
    %cst_44 = arith.constant dense<0.000000e+00> : vector<4x512xf32>
    %106 = tpu.matmul %39, %105, %cst_44 {dimension_numbers = #tpu.dot_dimension_numbers<[1], [0], [0], [1], [0, 0, 1, 1], [], []>} : vector<4x32xf32>, vector<32x512xf32>, vector<4x512xf32> -> vector<4x512xf32>
    %107 = arith.addf %44, %106 : vector<4x512xf32>
    %108 = vector.extract_strided_slice %107 {offsets = [0, 0], sizes = [4, 256], strides = [1, 1]} : vector<4x512xf32> to vector<4x256xf32>
    %109 = vector.extract_strided_slice %107 {offsets = [0, 256], sizes = [4, 256], strides = [1, 1]} : vector<4x512xf32> to vector<4x256xf32>
    %110 = tpu.concatenate %108, %109 in 0 : vector<4x256xf32>, vector<4x256xf32> -> vector<8x256xf32>
    %c0_45 = arith.constant 0 : index
    %c0_46 = arith.constant 0 : index
    %111 = vector.load %arg5[%c0_45, %c0_46] : memref<8x256xf32, #tpu.memory_space<vmem>>, vector<8x256xf32>
    tpu.vector_store %arg5[%c0_45, %c0_46], %110 {strides = array<i32>} : memref<8x256xf32, #tpu.memory_space<vmem>>, vector<8x256xf32>,
    return
  }
}

</mosaic_0001>

<bundles_post_ra>
// kernel: ip_adapter_forward.1
= control target key start
LH: loop header
LB: loop body
LE: loop exit
PB: predicated region body
PF: predicated region fallthrough
CT: control target
= control target key end

     0   :  { %vm27_vm0 = vcmask 261120   ;;  %s1399_s30 = smov 64   ;;  %s1400_s6 = smov 32   ;;  %v1402_v10 = vmov 1983009808   ;;  %vm62_vm1 = vcmask 1047556   ;;  %s1735_s4 = inlined_call_operand.vmem [shape: f32[33,128], index: 4, kind: input, shape index: {}]   ;;  %s1736_s1 = inlined_call_operand.vmem [shape: f32[18,32], index: 1, kind: input, shape index: {}]   ;;  %s1737_s3 = inlined_call_operand.vmem [shape: f32[152,32], index: 3, kind: input, shape index: {}]   ;;  %s1738_s0 = inlined_call_operand.vmem [shape: f32[6,512], index: 0, kind: input, shape index: {}]   ;;  %s1739_s2 = inlined_call_operand.vmem [shape: f32[36,6], index: 2, kind: input, shape index: {}]   ;;  %s1740_s5 = inlined_call_operand.vmem [shape: f32[8,256], index: 5, kind: output, shape index: {}]  }
   0x1   :  { %v24_v0 = vld [vmem:[%s1735_s4 + $0x18] sm:$0xff]  ;;  %v23_v1 = vld [vmem:[%s1735_s4 + $0x10] sm:$0xff]  ;;  %v22_v2 = vld [vmem:[%s1735_s4 + $0x8] sm:$0xff]  ;;  %s1401_s7 = smov 96   ;;  %v65_v11 = vunpack.c.l.s4 %v1402_v10  ;;  %v1403_v14 = vmov 1934713408  }
   0x2   :  { %43 = vmatpush.msra.mxu0 %v24_v0  ;;  %v21_v3 = vld [vmem:[%s1735_s4] sm:$0xff]  ;;  %v20_v4 = vld [vmem:[%s1736_s1 + $0x10] sm:$0x3]  ;;  %v77_v15 = vunpack.c.l.s4 %v1403_v14  ;;  %vm82_vm2 = vcmask 257024   ;;  %v1404_v30 = vmov 32.0   ;;  %v199_v47 = vld [vmem:[%s1737_s3 + $0x58] sm:$0xff] }
   0x3   :  { %v1358_v5 = vld [vmem:[%s1735_s4 + $0x20] ss:$0 sm:$0xff]  ;;  %v66_v16 = vunpack.c.0.s8 %v65_v11  ;;  %1361 = vrcp.f32 %v1404_v30  ;;  %v198_v48 = vld [vmem:[%s1737_s3 + $0x50] sm:$0xff]  ;;  %222 = vmatpush.msra.mxu3 %v199_v47  ;;  %v197_v49 = vld [vmem:[%s1737_s3 + $0x48] sm:$0xff]  ;;  %vm288_vm4 = vcmask 1045504   ;;  %vm272_vm11 = vcmask 48128  }
   0x4   :  { %44 = vmatpush.msra.mxu0 %v23_v1  ;;  %v78_v21 = vunpack.c.0.s8 %v77_v15  ;;  %v196_v50 = vld [vmem:[%s1737_s3 + $0x40] sm:$0xff]  ;;  %v233_v56 = vld [vmem:[%s1737_s3 + $0x78] sm:$0xff]  ;;  %v232_v57 = vld [vmem:[%s1737_s3 + $0x70] sm:$0xff]  ;;  %vm549_vm12 = vcmask 1043456   ;;  %vm620_vm13 = vcmask 31744   ;;  %vm729_vm14 = vcmask 64512  }
   0x5   :  { %223 = vmatpush.msra.mxu3 %v198_v48  ;;  %v268_v59 = vld [vmem:[%s1738_s0] sm:$0x3f]  ;;  %v231_v60 = vld [vmem:[%s1737_s3 + $0x68] sm:$0xff]  ;;  %v265_v30 = vld [vmem:[%s1739_s2 + $0x10] sm:$0xff] }
   0x6   :  { %45 = vmatpush.msra.mxu0 %v22_v2  ;;  %v230_v61 = vld [vmem:[%s1737_s3 + $0x60] sm:$0xff]  ;;  %v269_v0 = vld [vmem:[%s1738_s0 + $0x8] sm:$0x3f] }
   0x7   :  { %224 = vmatpush.msra.mxu3 %v197_v49  ;;  %v1359_v47 = vld [vmem:[%s1737_s3 + $0x88] ss:$0 sm:$0xff] }
   0x8   :  { %46 = vmatpush.msra.mxu0 %v21_v3 }
   0x9   :  { %1272 = vmatmul.msk.f32.vlgmr.msra.gmra.mxu0 %vm27_vm0, %v20_v4  ;;  %v1362_v31 = vpop.eup %1361  ;;  %225 = vmatpush.msra.mxu3 %v196_v50 }
   0xa   :  { %v90_v32 = vmul.f32 32.0, %v1362_v31  ;;  %vm94_vm3 = vweird.f32 %v1362_v31  ;;  %254 = vmatpush.msrb.mxu0 %v233_v56 }
   0xb   :  { %1279 = vmatpush.msk.msrb.mxu3 %vm288_vm4, %v268_v59 }
   0xc   :  { %v91_v33 = vsub.f32 1.0, %v90_v32  ;;  %255 = vmatpush.msrb.mxu0 %v232_v57  ;;  %v271_v32 = vld [vmem:[%s1738_s0 + $0x18] sm:$0x3f] }
   0xe   :  { %v92_v34 = vmul.f32 %v1362_v31, %v91_v33  ;;  %256 = vmatpush.msrb.mxu0 %v231_v60 }
  0x10   :  { %v93_v35 = vadd.f32 %v1362_v31, %v92_v34  ;;  %257 = vmatpush.msrb.mxu0 %v230_v61  ;;  %v1360_v34 = vld [vmem:[%s1737_s3 + $0x90] ss:$0 sm:$0xff] }
  0x12   :  { %v95_v36 = vsel %vm94_vm3, %v1362_v31, %v93_v35  ;;  %1285 = vmatpush.msk.msra.mxu0 %vm288_vm4, %v269_v0  ;;  %v266_v31 = vld [vmem:[%s1739_s2 + $0x18] sm:$0xff]  ;;  %v267_v35 = vld [vmem:[%s1739_s2 + $0x20] sm:$0xf] }
  0x86   :  { %v48_v6 = vpop.f32.mrf.mxu0 }
  0x87   :  { %v49_v7 = vadd.f32 %v1358_v5, %v48_v6 }
  0x89   :  { %55 = vrot.lane.b32.xlu1 %v49_v7, %s1399_s30  ;;  %58 = vrot.lane.b32.xlu0 %v49_v7, %s1400_s6 }
  0x91   :  { %52 = vrot.lane.b32.xlu0 %v49_v7, %s1401_s7 }
  0xfb   :  { %v59_v8 = vpop.permute.xlu0 %58  ;;  %v56_v9 = vpop.permute.xlu1 %55 }
  0xfc   :  { %v61_v12 = vrot.slane %v56_v9, 4  ;;  %v68_v13 = vrot.slane %v59_v8, 4 }
  0xfe   :  { %v63_v18 = vsel %vm62_vm1, %v61_v12, %v49_v7 }
  0xff   :  { %v67_v22 = vperm.slane %v63_v18, %v66_v16  ;;  %v263_v18 = vld [vmem:[%s1739_s2] sm:$0xff] }
 0x103   :  { %v53_v17 = vpop.permute.xlu0 %52 }
 0x104   :  { %v69_v19 = vsel %vm62_vm1, %v68_v13, %v53_v17  ;;  %v138_v17 = vld [vmem:[%s1737_s3 + $0x10] sm:$0xff] }
 0x105   :  { %v73_v20 = vperm.slane %v69_v19, %v66_v16  ;;  %v139_v16 = vld [vmem:[%s1737_s3 + $0x18] sm:$0xff] }
 0x106   :  { %158 = vmatpush.msra.mxu1 %v139_v16 }
 0x107   :  { %v74_v23 = vrot.slane %v73_v20, 4  ;;  %v137_v20 = vld [vmem:[%s1737_s3 + $0x8] sm:$0xff] }
 0x108   :  { %159 = vmatpush.msra.mxu1 %v138_v17 }
 0x109   :  { %v75_v24 = vsel %vm62_vm1, %v74_v23, %v67_v22  ;;  %v134_v22 = vld [vmem:[%s1736_s1] sm:$0xff]  ;;  %v172_v23 = vld [vmem:[%s1737_s3 + $0x38] sm:$0xff] }
 0x10a   :  { %v79_v25 = vperm.slane %v75_v24, %v78_v21  ;;  %v136_v21 = vld [vmem:[%s1737_s3] sm:$0xff]  ;;  %160 = vmatpush.msra.mxu1 %v137_v20  ;;  %v171_v24 = vld [vmem:[%s1737_s3 + $0x30] sm:$0xff]  ;;  %185 = vmatpush.msra.mxu2 %v172_v23 }
 0x10c   :  { %v83_v26 = vsel %vm82_vm2, %v79_v25, 0.0  ;;  %v80_v27 = vrot.slane %v79_v25, 4  ;;  %161 = vmatpush.msra.mxu1 %v136_v21  ;;  %186 = vmatpush.msra.mxu2 %v171_v24 }
 0x10d   :  { %84 = vadd.xlane.f32.xlu1 %v83_v26  ;;  %v170_v26 = vld [vmem:[%s1737_s3 + $0x28] sm:$0xff]  ;;  %1273 = vmatmul.msk.f32.vlgmr.msra.gmra.mxu1 %vm27_vm0, %v134_v22 }
 0x10e   :  { %v81_v28 = vsel %vm62_vm1, 0.0, %v80_v27  ;;  %v264_v27 = vld [vmem:[%s1739_s2 + $0x8] sm:$0xff]  ;;  %187 = vmatpush.msra.mxu2 %v170_v26 }
 0x10f   :  { %v86_v29 = vsel %vm82_vm2, %v81_v28, 0.0 }
 0x110   :  { %87 = vadd.xlane.f32.xlu2 %v86_v29  ;;  %v135_v29 = vld [vmem:[%s1736_s1 + $0x8] sm:$0xff] }
 0x115   :  { %1274 = vmatmul.msk.f32.gmra.mxu1 %vm27_vm0, %v135_v29 }
 0x180   :  { %v85_v37 = vpop.xlane.xlu1 %84 }
 0x181   :  { %v96_v38 = vmul.f32 %v95_v36, %v85_v37 }
 0x183   :  { %v98_v39 = vsub.f32 %v79_v25, %v96_v38  ;;  %v88_v40 = vpop.xlane.xlu2 %87  ;;  %v270_v25 = vld [vmem:[%s1738_s0 + $0x10] sm:$0x3f] }
 0x184   :  { %v97_v41 = vmul.f32 %v95_v36, %v88_v40  ;;  %1291 = vmatpush.msk.msrb.mxu1 %vm288_vm4, %v270_v25 }
 0x185   :  { %v100_v42 = vmul.f32 %v98_v39, %v98_v39  ;;  %1292 = vmatmul.msk.f32.vlgmr.msrb.gmra.mxu1 %vm272_vm11, %v263_v18 }
 0x186   :  { %v99_v43 = vsub.f32 %v81_v28, %v97_v41  ;;  %v169_v28 = vld [vmem:[%s1737_s3 + $0x20] sm:$0xff] }
 0x187   :  { %v102_v44 = vsel %vm82_vm2, %v100_v42, 0.0  ;;  %188 = vmatpush.msra.mxu2 %v169_v28 }
 0x188   :  { %103 = vadd.xlane.f32.xlu2 %v102_v44  ;;  %v101_v45 = vmul.f32 %v99_v43, %v99_v43  ;;  %1275 = vmatmul.msk.f32.vlgmr.msra.gmra.mxu2 %vm27_vm0, %v134_v22 }
 0x189   :  { %1297 = vmatpush.msk.msrb.mxu2 %vm288_vm4, %v271_v32 }
 0x18a   :  { %v105_v46 = vsel %vm82_vm2, %v101_v45, 0.0  ;;  %v163_v49 = vpop.f32.mrf.mxu1 }
 0x18b   :  { %106 = vadd.xlane.f32.xlu0 %v105_v46 }
 0x18d   :  { %1293 = vmatmul.msk.f32.gmra.mxu1 %vm272_vm11, %v264_v27 }
 0x190   :  { %1276 = vmatmul.msk.f32.gmra.mxu2 %vm27_vm0, %v135_v29 }
 0x195   :  { %1294 = vmatmul.msk.f32.gmra.mxu1 %vm272_vm11, %v265_v30 }
 0x198   :  { %1298 = vmatmul.msk.f32.vlgmr.msrb.gmra.mxu2 %vm272_vm11, %v263_v18 }
 0x19d   :  { %1295 = vmatmul.msk.f32.gmra.mxu1 %vm272_vm11, %v266_v31 }
 0x1a0   :  { %1299 = vmatmul.msk.f32.gmra.mxu2 %vm272_vm11, %v264_v27 }
 0x1a5   :  { %1296 = vmatmul.msk.f32.gmra.mxu1 %vm272_vm11, %v267_v35 }
 0x1a8   :  { %1300 = vmatmul.msk.f32.gmra.mxu2 %vm272_vm11, %v265_v30 }
 0x1b0   :  { %1301 = vmatmul.msk.f32.gmra.mxu2 %vm272_vm11, %v266_v31 }
 0x1b8   :  { %1302 = vmatmul.msk.f32.gmra.mxu2 %vm272_vm11, %v267_v35 }
 0x1fb   :  { %v104_v51 = vpop.xlane.xlu2 %103 }
 0x1fc   :  { %v108_v52 = vmul.f32 %v104_v51, %v95_v36 }
 0x1fe   :  { %v110_v53 = vadd.f32 1e-05, %v108_v52  ;;  %v107_v54 = vpop.xlane.xlu0 %106  ;;  %v1587_v52 = vpop.f32.mrf.mxu1 }
 0x1ff   :  { %v109_v55 = vmul.f32 %v107_v54, %v95_v36 }
 0x200   :  { %1363 = vrsqrt.f32 %v110_v53  ;;  %vm118_vm6 = vweird.f32 %v110_v53 }
 0x201   :  { %v111_v58 = vadd.f32 1e-05, %v109_v55 }
 0x203   :  { %1365 = vrsqrt.f32 %v111_v58  ;;  %vm128_vm9 = vweird.f32 %v111_v58 }
 0x206   :  { %v1364_v62 = vpop.eup %1363 }
 0x207   :  { %v113_v63 = vmul.f32 %v1364_v62, %v110_v53  ;;  %vm119_vm5 = vweird.f32 %v1364_v62  ;;  %v1589_v53 = vpop.f32.mrf.mxu1 }
 0x208   :  { %vm120_vm7 = vmor %vm118_vm6, %vm119_vm5 }
 0x209   :  { %v1366_v1 = vpop.eup %1365  ;;  %v114_v2 = vmul.f32 %v1364_v62, %v113_v63 }
 0x20a   :  { %v123_v3 = vmul.f32 %v1366_v1, %v111_v58  ;;  %vm129_vm8 = vweird.f32 %v1366_v1 }
 0x20b   :  { %v115_v4 = vmul.f32 0.5, %v114_v2  ;;  %vm130_vm10 = vmor %vm128_vm9, %vm129_vm8  ;;  %v190_v42 = vpop.f32.mrf.mxu2 }
 0x20c   :  { %v124_v5 = vmul.f32 %v1366_v1, %v123_v3  ;;  %697 = vxpose.xlu2.b32.start.end [1/1] (short) (narrow) %v190_v42, 32 }
 0x20d   :  { %v116_v6 = vsub.f32 1.5, %v115_v4 }
 0x20e   :  { %v125_v7 = vmul.f32 0.5, %v124_v5 }
 0x20f   :  { %v117_v8 = vmul.f32 %v1364_v62, %v116_v6  ;;  %v1593_v55 = vpop.f32.mrf.mxu1 }
 0x210   :  { %v126_v9 = vsub.f32 1.5, %v125_v7 }
 0x211   :  { %v121_v10 = vsel %vm120_vm7, %v1364_v62, %v117_v8 }
 0x212   :  { %v127_v11 = vmul.f32 %v1366_v1, %v126_v9  ;;  %v132_v12 = vmul.f32 %v121_v10, %v98_v39 }
 0x213   :  { %v193_v51 = vpop.f32.mrf.mxu2 }
 0x214   :  { %v131_v13 = vsel %vm130_vm10, %v1366_v1, %v127_v11  ;;  %204 = vst [vmem:[#allocation1] ss:$2 sm:$0xff] %v132_v12 }
 0x215   :  { %v133_v14 = vmul.f32 %v131_v13, %v99_v43 }
 0x217   :  { %206 = vst [vmem:[#allocation1 + $0x1] ss:$2 sm:$0xff] %v133_v14  ;;  %v1597_v57 = vpop.f32.mrf.mxu1 }
 0x21b   :  { %v1591_v54 = vpop.f32.mrf.mxu2 }
 0x21e   :  { %v207_v15 = vld.sshfl [vmem:[#allocation1] sm:$0xff pattern:$0x75316420] }
 0x21f   :  { %1277 = vmatmul.msk.f32.vlgmr.msra.gmra.mxu3 %vm27_vm0, %v207_v15  ;;  %236 = vst [vmem:[#allocation1] ss:$2 sm:$0xff] %v132_v12  ;;  %v1601_v59 = vpop.f32.mrf.mxu1 }
 0x220   :  { %238 = vst [vmem:[#allocation1 + $0x1] ss:$2 sm:$0xff] %v133_v14 }
 0x223   :  { %v1595_v56 = vpop.f32.mrf.mxu2 }
 0x227   :  { %v239_v19 = vld.sshfl [vmem:[#allocation1] sm:$0xff pattern:$0x75316420]  ;;  %1280 = vmatmul.msk.f32.vlgmr.msrb.gmra.mxu3 %vm272_vm11, %v263_v18  ;;  %v1605_v61 = vpop.f32.mrf.mxu1 }
 0x228   :  { %1278 = vmatmul.msk.f32.vlgmr.msrb.gmra.mxu0 %vm27_vm0, %v239_v19 }
 0x22b   :  { %v1599_v58 = vpop.f32.mrf.mxu2 }
 0x22c   :  { %1069 = vxpose.xlu2.b32.start.end [1/1] (short) (narrow) %v193_v51, 32 }
 0x22f   :  { %1281 = vmatmul.msk.f32.gmra.mxu3 %vm272_vm11, %v264_v27 }
 0x230   :  { %1286 = vmatmul.msk.f32.vlgmr.msra.gmra.mxu0 %vm272_vm11, %v263_v18 }
 0x233   :  { %v1603_v60 = vpop.f32.mrf.mxu2 }
 0x237   :  { %1282 = vmatmul.msk.f32.gmra.mxu3 %vm272_vm11, %v265_v30 }
 0x238   :  { %1287 = vmatmul.msk.f32.gmra.mxu0 %vm272_vm11, %v264_v27 }
 0x23b   :  { %v1611_v0 = vpop.f32.mrf.mxu2 }
 0x23f   :  { %1283 = vmatmul.msk.f32.gmra.mxu3 %vm272_vm11, %v266_v31 }
 0x240   :  { %1288 = vmatmul.msk.f32.gmra.mxu0 %vm272_vm11, %v265_v30 }
 0x247   :  { %1284 = vmatmul.msk.f32.gmra.mxu3 %vm272_vm11, %v267_v35 }
 0x248   :  { %1289 = vmatmul.msk.f32.gmra.mxu0 %vm272_vm11, %v266_v31 }
 0x250   :  { %1290 = vmatmul.msk.f32.gmra.mxu0 %vm272_vm11, %v267_v35 }
 0x2a2   :  { %v227_v33 = vpop.f32.mrf.mxu3 }
 0x2a3   :  { %v1579_v50 = vadd.f32 %v1359_v47, %v227_v33 }
 0x2a5   :  { %v259_v36 = vpop.f32.mrf.mxu0 }
 0x2a6   :  { %v260_v37 = vadd.f32 %v1360_v34, %v259_v36 }
 0x2a8   :  { %588 = vxpose.xlu1.b32.start.end [1/1] (short) (narrow) %v260_v37, 32  ;;  %v959_v38 = vrot.slane %v260_v37, 4 }
 0x2aa   :  { %961 = vxpose.xlu0.b32.start.end [1/1] (short) (narrow) %v959_v38, 32  ;;  %v318_v39 = vpop.f32.mrf.mxu3 }
 0x2ad   :  { %v350_v40 = vpop.f32.mrf.mxu0 }
 0x2b2   :  { %v321_v41 = vpop.f32.mrf.mxu3 }
 0x2b5   :  { %v353_v43 = vpop.f32.mrf.mxu0 }
 0x2ba   :  { %v324_v44 = vpop.f32.mrf.mxu3 }
 0x2bd   :  { %v356_v45 = vpop.f32.mrf.mxu0 }
 0x2c2   :  { %v327_v46 = vpop.f32.mrf.mxu3 }
 0x2c3   :  { %444 = vmatpush.msra.mxu3 %v327_v46  ;;  %487 = vmatpush.msra.mxu1 %v327_v46 }
 0x2c5   :  { %v359_v48 = vpop.f32.mrf.mxu0  ;;  %445 = vmatpush.msra.mxu3 %v324_v44  ;;  %488 = vmatpush.msra.mxu1 %v324_v44 }
 0x2c6   :  { %464 = vmatpush.msrb.mxu0 %v359_v48  ;;  %507 = vmatpush.msra.mxu2 %v359_v48 }
 0x2c7   :  { %446 = vmatpush.msra.mxu3 %v321_v41  ;;  %489 = vmatpush.msra.mxu1 %v321_v41 }
 0x2c8   :  { %465 = vmatpush.msrb.mxu0 %v356_v45  ;;  %508 = vmatpush.msra.mxu2 %v356_v45 }
 0x2c9   :  { %447 = vmatpush.msra.mxu3 %v318_v39  ;;  %490 = vmatpush.msra.mxu1 %v318_v39 }
 0x2ca   :  { %466 = vmatpush.msrb.mxu0 %v353_v43  ;;  %509 = vmatpush.msra.mxu2 %v353_v43  ;;  %v1609_v63 = vpop.f32.mrf.mxu3 }
 0x2cb   :  { %1303 = vmatmul.msk.f32.vlgmr.msra.gmra.mxu3 %vm27_vm0, %v163_v49  ;;  %1305 = vmatmul.msk.f32.vlgmr.msra.gmra.mxu1 %vm27_vm0, %v1579_v50 }
 0x2cc   :  { %467 = vmatpush.msrb.mxu0 %v350_v40  ;;  %510 = vmatpush.msra.mxu2 %v350_v40 }
 0x2cd   :  { %1304 = vmatmul.msk.f32.vlgmr.msrb.gmra.mxu0 %vm27_vm0, %v163_v49  ;;  %1306 = vmatmul.msk.f32.vlgmr.msra.gmra.mxu2 %vm27_vm0, %v1579_v50  ;;  %v1607_v62 = vpop.f32.mrf.mxu0 }
 0x348   :  { %v492_v1 = vpop.f32.mrf.mxu1 }
 0x349   :  { %v550_v2 = vsel %vm549_vm12, %v492_v1, -inf }
 0x34a   :  { %v551_v3 = vrot.slane %v550_v2, 4  ;;  %v469_v4 = vpop.f32.mrf.mxu0 }
 0x34b   :  { %v521_v5 = vrot.slane %v469_v4, 4 }
 0x34c   :  { %v552_v6 = vmax.f32 %v550_v2, %v551_v3 }
 0x34d   :  { %v522_v7 = vmax.f32 %v469_v4, %v521_v5 }
 0x34e   :  { %v553_v8 = vrot.slane %v552_v6, 2  ;;  %v449_v9 = vpop.f32.mrf.mxu3 }
 0x34f   :  { %v523_v10 = vrot.slane %v522_v7, 2  ;;  %v515_v11 = vrot.slane %v449_v9, 4 }
 0x350   :  { %v554_v12 = vmax.f32 %v552_v6, %v553_v8  ;;  %v512_v13 = vpop.f32.mrf.mxu2 }
 0x351   :  { %v524_v14 = vmax.f32 %v522_v7, %v523_v10  ;;  %v516_v15 = vmax.f32 %v449_v9, %v515_v11  ;;  %v557_v16 = vsel %vm549_vm12, %v512_v13, -inf }
 0x352   :  { %v555_v17 = vrot.slane %v554_v12, 1  ;;  %v558_v18 = vrot.slane %v557_v16, 4 }
 0x353   :  { %v525_v19 = vrot.slane %v524_v14, 1  ;;  %v517_v20 = vrot.slane %v516_v15, 2 }
 0x354   :  { %v556_v21 = vmax.f32 %v554_v12, %v555_v17  ;;  %v559_v22 = vmax.f32 %v557_v16, %v558_v18  ;;  %v604_v16 = vpop.trf.xlu1  ;;  %v713_v18 = vpop.trf.xlu2 }
 0x355   :  { %v526_v23 = vmax.f32 %v524_v14, %v525_v19  ;;  %v518_v24 = vmax.f32 %v516_v15, %v517_v20 }
 0x356   :  { %v564_v25 = vsub.f32 %v492_v1, %v556_v21  ;;  %v560_v26 = vrot.slane %v559_v22, 2 }
 0x357   :  { %v528_v27 = vsub.f32 %v469_v4, %v526_v23  ;;  %v519_v28 = vrot.slane %v518_v24, 1 }
 0x358   :  { %v566_v29 = vmul.f32 1.442695, %v564_v25  ;;  %v561_v30 = vmax.f32 %v559_v22, %v560_v26 }
 0x359   :  { %v531_v31 = vmul.f32 1.442695, %v528_v27  ;;  %v520_v32 = vmax.f32 %v518_v24, %v519_v28 }
 0x35a   :  { %1367 = vpow2.f32 %v566_v29  ;;  %v562_v33 = vrot.slane %v561_v30, 1 }
 0x35b   :  { %1369 = vpow2.f32 %v531_v31  ;;  %v527_v34 = vsub.f32 %v449_v9, %v520_v32 }
 0x35c   :  { %v563_v35 = vmax.f32 %v561_v30, %v562_v33  ;;  %v605_v27 = vpop.trf.xlu1  ;;  %v714_v28 = vpop.trf.xlu2 }
 0x35d   :  { %v529_v36 = vmul.f32 1.442695, %v527_v34 }
 0x35e   :  { %v565_v37 = vsub.f32 %v512_v13, %v563_v35 }
 0x35f   :  { %1371 = vpow2.f32 %v529_v36 }
 0x360   :  { %v1368_v38 = vpop.eup %1367  ;;  %v568_v39 = vmul.f32 1.442695, %v565_v37 }
 0x361   :  { %v1370_v40 = vpop.eup %1369  ;;  %v570_v41 = vsel %vm549_vm12, %v1368_v38, 0.0 }
 0x362   :  { %v571_v42 = vrot.slane %v570_v41, 4  ;;  %v539_v43 = vrot.slane %v1370_v40, 4  ;;  %1373 = vpow2.f32 %v568_v39 }
 0x364   :  { %v572_v44 = vadd.f32 %v571_v42, %v570_v41  ;;  %v540_v45 = vadd.f32 %v1370_v40, %v539_v43 }
 0x365   :  { %v1372_v46 = vpop.eup %1371 }
 0x366   :  { %v573_v47 = vrot.slane %v572_v44, 2  ;;  %v533_v48 = vrot.slane %v1372_v46, 4  ;;  %v541_v49 = vrot.slane %v540_v45, 2 }
 0x368   :  { %v1374_v51 = vpop.eup %1373  ;;  %v574_v1 = vadd.f32 %v573_v47, %v572_v44  ;;  %v542_v2 = vadd.f32 %v541_v49, %v540_v45  ;;  %v534_v3 = vadd.f32 %v1372_v46, %v533_v48 }
 0x369   :  { %v577_v4 = vsel %vm549_vm12, %v1374_v51, 0.0 }
 0x36a   :  { %v575_v5 = vrot.slane %v574_v1, 1  ;;  %v578_v6 = vrot.slane %v577_v4, 4  ;;  %v543_v7 = vrot.slane %v542_v2, 1  ;;  %v535_v8 = vrot.slane %v534_v3, 2 }
 0x36c   :  { %v576_v9 = vadd.f32 %v575_v5, %v574_v1  ;;  %v579_v10 = vadd.f32 %v578_v6, %v577_v4  ;;  %v544_v11 = vadd.f32 %v543_v7, %v542_v2  ;;  %v536_v12 = vadd.f32 %v535_v8, %v534_v3 }
 0x36e   :  { %1375 = vrcp.f32 %v576_v9  ;;  %v580_v13 = vrot.slane %v579_v10, 2  ;;  %v537_v14 = vrot.slane %v536_v12, 1 }
 0x36f   :  { %1377 = vrcp.f32 %v544_v11 }
 0x370   :  { %v581_v15 = vadd.f32 %v580_v13, %v579_v10  ;;  %v538_v17 = vadd.f32 %v537_v14, %v536_v12 }
 0x372   :  { %v582_v19 = vrot.slane %v581_v15, 1  ;;  %1379 = vrcp.f32 %v538_v17 }
 0x374   :  { %v1376_v20 = vpop.eup %1375  ;;  %v583_v21 = vadd.f32 %v582_v19, %v581_v15 }
 0x375   :  { %v1378_v22 = vpop.eup %1377  ;;  %v586_v23 = vmul.f32 %v1376_v20, %v1368_v38 }
 0x376   :  { %1381 = vrcp.f32 %v583_v21  ;;  %v548_v24 = vmul.f32 %v1378_v22, %v1370_v40 }
 0x377   :  { %1307 = vmatpush.msk.msrb.mxu3 %vm549_vm12, %v586_v23 }
 0x378   :  { %v1380_v25 = vpop.eup %1379  ;;  %786 = vmatpush.msrb.mxu2 %v548_v24  ;;  %1308 = vmatmul.msk.f32.vlgmr.msrb.gmra.mxu3 %vm620_vm13, %v604_v16 }
 0x379   :  { %1321 = vmatmul.msk.f32.vlgmr.msrb.gmra.mxu2 %vm729_vm14, %v713_v18  ;;  %815 = vmatpush.msra.mxu3 %v1601_v59  ;;  %v547_v26 = vmul.f32 %v1380_v25, %v1372_v46 }
 0x37a   :  { %878 = vmatpush.msra.mxu2 %v1603_v60 }
 0x37b   :  { %816 = vmatpush.msra.mxu3 %v1597_v57  ;;  %757 = vmatpush.msrb.mxu1 %v547_v26 }
 0x37c   :  { %v1382_v29 = vpop.eup %1381  ;;  %879 = vmatpush.msra.mxu2 %v1599_v58  ;;  %1317 = vmatmul.msk.f32.vlgmr.msrb.gmra.mxu1 %vm729_vm14, %v713_v18 }
 0x37d   :  { %v587_v30 = vmul.f32 %v1382_v29, %v1374_v51  ;;  %817 = vmatpush.msra.mxu3 %v1593_v55  ;;  %858 = vmatpush.msra.mxu1 %v1601_v59  ;;  %v606_v59 = vpop.trf.xlu1 }
 0x37e   :  { %880 = vmatpush.msra.mxu2 %v1595_v56 }
 0x37f   :  { %818 = vmatpush.msra.mxu3 %v1589_v53  ;;  %859 = vmatpush.msra.mxu1 %v1597_v57  ;;  %v715_v57 = vpop.trf.xlu2 }
 0x380   :  { %881 = vmatpush.msra.mxu2 %v1591_v54  ;;  %1312 = vmatpush.msk.msra.mxu0 %vm549_vm12, %v587_v30 }
 0x381   :  { %1309 = vmatmul.msk.f32.gmra.mxu3 %vm620_vm13, %v605_v27  ;;  %1313 = vmatmul.msk.f32.vlgmr.msra.gmra.mxu0 %vm620_vm13, %v604_v16 }
 0x382   :  { %1322 = vmatmul.msk.f32.gmra.mxu2 %vm729_vm14, %v714_v28  ;;  %835 = vmatpush.msrb.mxu0 %v1603_v60 }
 0x383   :  { %860 = vmatpush.msra.mxu1 %v1593_v55 }
 0x384   :  { %836 = vmatpush.msrb.mxu0 %v1599_v58  ;;  %1318 = vmatmul.msk.f32.gmra.mxu1 %vm729_vm14, %v714_v28 }
 0x385   :  { %861 = vmatpush.msra.mxu1 %v1589_v53  ;;  %v607_v55 = vpop.trf.xlu1  ;;  %v843_v53 = vrot.slane %v1579_v50, 4 }
 0x386   :  { %837 = vmatpush.msrb.mxu0 %v1595_v56 }
 0x387   :  { %v716_v58 = vpop.trf.xlu2 }
 0x388   :  { %838 = vmatpush.msrb.mxu0 %v1591_v54 }
 0x389   :  { %1310 = vmatmul.msk.f32.gmra.mxu3 %vm620_vm13, %v606_v59  ;;  %1314 = vmatmul.msk.f32.gmra.mxu0 %vm620_vm13, %v605_v27 }
 0x38a   :  { %1323 = vmatmul.msk.f32.gmra.mxu2 %vm729_vm14, %v715_v57 }
 0x38c   :  { %1319 = vmatmul.msk.f32.gmra.mxu1 %vm729_vm14, %v715_v57 }
 0x391   :  { %1311 = vmatmul.msk.f32.gmra.mxu3 %vm620_vm13, %v607_v55  ;;  %1315 = vmatmul.msk.f32.gmra.mxu0 %vm620_vm13, %v606_v59 }
 0x392   :  { %1324 = vmatmul.msk.f32.gmra.mxu2 %vm729_vm14, %v716_v58 }
 0x394   :  { %1320 = vmatmul.msk.f32.gmra.mxu1 %vm729_vm14, %v716_v58 }
 0x399   :  { %1316 = vmatmul.msk.f32.gmra.mxu0 %vm620_vm13, %v607_v55  ;;  %1325 = vmatmul.msk.f32.vlgmr.msra.gmra.mxu3 %vm27_vm0, %v1587_v52 }
 0x39a   :  { %1328 = vmatmul.msk.f32.vlgmr.msra.gmra.mxu2 %vm27_vm0, %v843_v53 }
 0x39c   :  { %1327 = vmatmul.msk.f32.vlgmr.msra.gmra.mxu1 %vm27_vm0, %v843_v53 }
 0x3a1   :  { %1326 = vmatmul.msk.f32.vlgmr.msrb.gmra.mxu0 %vm27_vm0, %v1587_v52 }
 0x3f9   :  { %v759_v54 = vpop.f32.mrf.mxu1 }
 0x3fb   :  { %v656_v56 = vpop.f32.mrf.mxu3 }
 0x3fc   :  { %v1658_v60 = vadd.f32 %v759_v54, %v656_v56  ;;  %v788_v31 = vpop.f32.mrf.mxu2 }
 0x3fe   :  { %v685_v32 = vpop.f32.mrf.mxu0 }
 0x3ff   :  { %v1660_v33 = vadd.f32 %v788_v31, %v685_v32 }
 0x401   :  { %v762_v50 = vpop.f32.mrf.mxu1 }
 0x404   :  { %v659_v34 = vpop.f32.mrf.mxu3 }
 0x405   :  { %v1662_v35 = vadd.f32 %v762_v50, %v659_v34  ;;  %v791_v36 = vpop.f32.mrf.mxu2 }
 0x406   :  { %v688_v37 = vpop.f32.mrf.mxu0 }
 0x407   :  { %v1664_v38 = vadd.f32 %v791_v36, %v688_v37 }
 0x409   :  { %v1666_v39 = vpop.f32.mrf.mxu1 }
 0x40c   :  { %v1668_v40 = vpop.f32.mrf.mxu3 }
 0x40d   :  { %v1670_v52 = vpop.f32.mrf.mxu2 }
 0x40e   :  { %v1672_v41 = vpop.f32.mrf.mxu0 }
 0x411   :  { %v1674_v42 = vpop.f32.mrf.mxu1 }
 0x414   :  { %v1676_v43 = vpop.f32.mrf.mxu3 }
 0x415   :  { %v1678_v44 = vpop.f32.mrf.mxu2 }
 0x416   :  { %v1680_v45 = vpop.f32.mrf.mxu0 }
 0x419   :  { %v863_v46 = vpop.f32.mrf.mxu1 }
 0x41a   :  { %v920_v47 = vsel %vm549_vm12, %v863_v46, -inf }
 0x41b   :  { %v921_v48 = vrot.slane %v920_v47, 4 }
 0x41c   :  { %v820_v49 = vpop.f32.mrf.mxu3 }
 0x41d   :  { %v922_v51 = vmax.f32 %v920_v47, %v921_v48  ;;  %v886_v1 = vrot.slane %v820_v49, 4  ;;  %v883_v2 = vpop.f32.mrf.mxu2 }
 0x41e   :  { %v927_v3 = vsel %vm549_vm12, %v883_v2, -inf  ;;  %v840_v4 = vpop.f32.mrf.mxu0 }
 0x41f   :  { %v923_v5 = vrot.slane %v922_v51, 2  ;;  %v887_v6 = vmax.f32 %v820_v49, %v886_v1  ;;  %v928_v7 = vrot.slane %v927_v3, 4  ;;  %v892_v8 = vrot.slane %v840_v4, 4 }
 0x421   :  { %v924_v9 = vmax.f32 %v922_v51, %v923_v5  ;;  %v888_v10 = vrot.slane %v887_v6, 2  ;;  %v929_v11 = vmax.f32 %v927_v3, %v928_v7  ;;  %v893_v12 = vmax.f32 %v840_v4, %v892_v8 }
 0x423   :  { %v925_v13 = vrot.slane %v924_v9, 1  ;;  %v889_v14 = vmax.f32 %v887_v6, %v888_v10  ;;  %v930_v15 = vrot.slane %v929_v11, 2  ;;  %v894_v16 = vrot.slane %v893_v12, 2 }
 0x425   :  { %v926_v17 = vmax.f32 %v924_v9, %v925_v13  ;;  %v890_v18 = vrot.slane %v889_v14, 1  ;;  %v931_v19 = vmax.f32 %v929_v11, %v930_v15  ;;  %v895_v20 = vmax.f32 %v893_v12, %v894_v16  ;;  %v977_v15 = vpop.trf.xlu0 }
 0x427   :  { %v934_v21 = vsub.f32 %v863_v46, %v926_v17  ;;  %v891_v22 = vmax.f32 %v889_v14, %v890_v18  ;;  %v932_v23 = vrot.slane %v931_v19, 1  ;;  %v896_v24 = vrot.slane %v895_v20, 1  ;;  %v1085_v17 = vpop.trf.xlu2 }
 0x429   :  { %v936_v25 = vmul.f32 1.442695, %v934_v21  ;;  %v898_v26 = vsub.f32 %v820_v49, %v891_v22  ;;  %v933_v27 = vmax.f32 %v931_v19, %v932_v23  ;;  %v897_v28 = vmax.f32 %v895_v20, %v896_v24 }
 0x42a   :  { %v769_v22 = vadd.f32 %v1674_v42, %v1676_v43  ;;  %v795_v43 = vadd.f32 %v1670_v52, %v1672_v41 }
 0x42b   :  { %1383 = vpow2.f32 %v936_v25  ;;  %v900_v29 = vmul.f32 1.442695, %v898_v26  ;;  %v935_v30 = vsub.f32 %v883_v2, %v933_v27  ;;  %v899_v59 = vsub.f32 %v840_v4, %v897_v28 }
 0x42c   :  { %v766_v25 = vadd.f32 %v1666_v39, %v1668_v40 }
 0x42d   :  { %1385 = vpow2.f32 %v900_v29  ;;  %v938_v57 = vmul.f32 1.442695, %v935_v30  ;;  %v902_v55 = vmul.f32 1.442695, %v899_v59  ;;  %v978_v28 = vpop.trf.xlu0  ;;  %v798_v29 = vadd.f32 %v1678_v44, %v1680_v45 }
 0x42f   :  { %1387 = vpow2.f32 %v938_v57  ;;  %v1086_v42 = vpop.trf.xlu2 }
 0x430   :  { %1389 = vpow2.f32 %v902_v55 }
 0x431   :  { %v1384_v58 = vpop.eup %1383 }
 0x432   :  { %v940_v53 = vsel %vm549_vm12, %v1384_v58, 0.0 }
 0x433   :  { %v1386_v54 = vpop.eup %1385  ;;  %v941_v56 = vrot.slane %v940_v53, 4 }
 0x434   :  { %v904_v31 = vrot.slane %v1386_v54, 4 }
 0x435   :  { %v1388_v32 = vpop.eup %1387  ;;  %v942_v50 = vadd.f32 %v941_v56, %v940_v53  ;;  %v979_v39 = vpop.trf.xlu0 }
 0x436   :  { %v1390_v34 = vpop.eup %1389  ;;  %v947_v36 = vsel %vm549_vm12, %v1388_v32, 0.0  ;;  %v905_v37 = vadd.f32 %v1386_v54, %v904_v31 }
 0x437   :  { %v943_v46 = vrot.slane %v942_v50, 2  ;;  %v948_v47 = vrot.slane %v947_v36, 4  ;;  %v910_v48 = vrot.slane %v1390_v34, 4  ;;  %v1087_v40 = vpop.trf.xlu2 }
 0x438   :  { %v906_v49 = vrot.slane %v905_v37, 2 }
 0x439   :  { %v944_v51 = vadd.f32 %v943_v46, %v942_v50  ;;  %v949_v1 = vadd.f32 %v948_v47, %v947_v36  ;;  %v911_v2 = vadd.f32 %v1390_v34, %v910_v48 }
 0x43a   :  { %v907_v3 = vadd.f32 %v906_v49, %v905_v37 }
 0x43b   :  { %v945_v4 = vrot.slane %v944_v51, 1  ;;  %v950_v5 = vrot.slane %v949_v1, 2  ;;  %v912_v6 = vrot.slane %v911_v2, 2 }
 0x43c   :  { %v908_v7 = vrot.slane %v907_v3, 1 }
 0x43d   :  { %v946_v8 = vadd.f32 %v945_v4, %v944_v51  ;;  %v951_v9 = vadd.f32 %v950_v5, %v949_v1  ;;  %v913_v10 = vadd.f32 %v912_v6, %v911_v2 }
 0x43e   :  { %v909_v11 = vadd.f32 %v908_v7, %v907_v3 }
 0x43f   :  { %1391 = vrcp.f32 %v946_v8  ;;  %v952_v12 = vrot.slane %v951_v9, 1  ;;  %v914_v13 = vrot.slane %v913_v10, 1 }
 0x440   :  { %1393 = vrcp.f32 %v909_v11 }
 0x441   :  { %v953_v14 = vadd.f32 %v952_v12, %v951_v9  ;;  %v915_v16 = vadd.f32 %v914_v13, %v913_v10 }
 0x443   :  { %1395 = vrcp.f32 %v953_v14 }
 0x444   :  { %1397 = vrcp.f32 %v915_v16 }
 0x445   :  { %v1392_v18 = vpop.eup %1391 }
 0x446   :  { %v1394_v19 = vpop.eup %1393  ;;  %v956_v20 = vmul.f32 %v1392_v18, %v1384_v58 }
 0x447   :  { %v918_v21 = vmul.f32 %v1394_v19, %v1386_v54 }
 0x448   :  { %1329 = vmatpush.msk.msrb.mxu3 %vm549_vm12, %v956_v20 }
 0x449   :  { %v1396_v23 = vpop.eup %1395  ;;  %1128 = vmatpush.msrb.mxu1 %v918_v21  ;;  %1330 = vmatmul.msk.f32.vlgmr.msrb.gmra.mxu3 %vm620_vm13, %v977_v15 }
 0x44a   :  { %v1398_v24 = vpop.eup %1397  ;;  %v957_v26 = vmul.f32 %v1396_v23, %v1388_v32  ;;  %1186 = vmatpush.msra.mxu3 %v769_v22  ;;  %1339 = vmatmul.msk.f32.vlgmr.msrb.gmra.mxu1 %vm729_vm14, %v1085_v17 }
 0x44b   :  { %v919_v27 = vmul.f32 %v1398_v24, %v1390_v34 }
 0x44c   :  { %1334 = vmatpush.msk.msra.mxu0 %vm549_vm12, %v957_v26  ;;  %1187 = vmatpush.msra.mxu3 %v766_v25 }
 0x44d   :  { %1157 = vmatpush.msrb.mxu2 %v919_v27  ;;  %1335 = vmatmul.msk.f32.vlgmr.msra.gmra.mxu0 %vm620_vm13, %v977_v15 }
 0x44e   :  { %1343 = vmatmul.msk.f32.vlgmr.msrb.gmra.mxu2 %vm729_vm14, %v1085_v17  ;;  %1206 = vmatpush.msrb.mxu0 %v798_v29 }
 0x44f   :  { %1188 = vmatpush.msra.mxu3 %v1662_v35  ;;  %v1088_v35 = vpop.trf.xlu2 }
 0x450   :  { %1207 = vmatpush.msrb.mxu0 %v795_v43 }
 0x451   :  { %1189 = vmatpush.msra.mxu3 %v1658_v60  ;;  %v980_v60 = vpop.trf.xlu0 }
 0x452   :  { %1208 = vmatpush.msrb.mxu0 %v1664_v38  ;;  %1331 = vmatmul.msk.f32.gmra.mxu3 %vm620_vm13, %v978_v28 }
 0x453   :  { %1340 = vmatmul.msk.f32.gmra.mxu1 %vm729_vm14, %v1086_v42 }
 0x454   :  { %1209 = vmatpush.msrb.mxu0 %v1660_v33  ;;  %v262_v33 = vld [vmem:[%s1737_s3 + $0x80] sm:$0xf] }
 0x455   :  { %1336 = vmatmul.msk.f32.gmra.mxu0 %vm620_vm13, %v978_v28 }
 0x456   :  { %1344 = vmatmul.msk.f32.gmra.mxu2 %vm729_vm14, %v1086_v42 }
 0x45a   :  { %1332 = vmatmul.msk.f32.gmra.mxu3 %vm620_vm13, %v979_v39 }
 0x45b   :  { %1341 = vmatmul.msk.f32.gmra.mxu1 %vm729_vm14, %v1087_v40 }
 0x45d   :  { %1337 = vmatmul.msk.f32.gmra.mxu0 %vm620_vm13, %v979_v39 }
 0x45e   :  { %1345 = vmatmul.msk.f32.gmra.mxu2 %vm729_vm14, %v1087_v40 }
 0x462   :  { %1333 = vmatmul.msk.f32.gmra.mxu3 %vm620_vm13, %v980_v60 }
 0x463   :  { %1342 = vmatmul.msk.f32.gmra.mxu1 %vm729_vm14, %v1088_v35 }
 0x465   :  { %1338 = vmatmul.msk.f32.gmra.mxu0 %vm620_vm13, %v980_v60 }
 0x466   :  { %1346 = vmatmul.msk.f32.gmra.mxu2 %vm729_vm14, %v1088_v35 }
 0x46a   :  { %1347 = vmatmul.msk.f32.vlgmr.msra.gmra.mxu3 %vm27_vm0, %v262_v33 }
 0x46d   :  { %1348 = vmatmul.msk.f32.vlgmr.msrb.gmra.mxu0 %vm27_vm0, %v262_v33 }
 0x4c7   :  { %v1130_v38 = vpop.f32.mrf.mxu1 }
 0x4ca   :  { %v1057_v52 = vpop.f32.mrf.mxu0 }
 0x4cc   :  { %v1028_v41 = vpop.f32.mrf.mxu3 }
 0x4cd   :  { %v1131_v47 = vadd.f32 %v1130_v38, %v1028_v41 }
 0x4d0   :  { %v1133_v45 = vpop.f32.mrf.mxu1 }
 0x4d1   :  { %v1159_v44 = vpop.f32.mrf.mxu2 }
 0x4d2   :  { %v1060_v30 = vpop.f32.mrf.mxu0  ;;  %v1160_v51 = vadd.f32 %v1159_v44, %v1057_v52 }
 0x4d5   :  { %v1031_v59 = vpop.f32.mrf.mxu3 }
 0x4d6   :  { %v1134_v37 = vadd.f32 %v1133_v45, %v1031_v59 }
 0x4d8   :  { %v1136_v55 = vpop.f32.mrf.mxu1 }
 0x4d9   :  { %v1162_v57 = vpop.f32.mrf.mxu2 }
 0x4da   :  { %v1063_v53 = vpop.f32.mrf.mxu0  ;;  %v1163_v49 = vadd.f32 %v1162_v57, %v1060_v30 }
 0x4dd   :  { %v1034_v58 = vpop.f32.mrf.mxu3 }
 0x4de   :  { %v1137_v50 = vadd.f32 %v1136_v55, %v1034_v58 }
 0x4e0   :  { %v1139_v31 = vpop.f32.mrf.mxu1 }
 0x4e1   :  { %v1165_v54 = vpop.f32.mrf.mxu2 }
 0x4e2   :  { %v1066_v34 = vpop.f32.mrf.mxu0  ;;  %v1166_v48 = vadd.f32 %v1165_v54, %v1063_v53 }
 0x4e5   :  { %v1037_v56 = vpop.f32.mrf.mxu3 }
 0x4e6   :  { %v1140_v32 = vadd.f32 %v1139_v31, %v1037_v56 }
 0x4e8   :  { %1226 = vmatpush.msra.mxu1 %v1140_v32 }
 0x4e9   :  { %v1168_v36 = vpop.f32.mrf.mxu2 }
 0x4ea   :  { %v1169_v46 = vadd.f32 %v1168_v36, %v1066_v34  ;;  %1227 = vmatpush.msra.mxu1 %v1137_v50  ;;  %v1211_v7 = vpop.f32.mrf.mxu0 }
 0x4eb   :  { %v1255_v10 = vadd.f32 %v1211_v7, %v1607_v62 }
 0x4ec   :  { %1246 = vmatpush.msra.mxu2 %v1169_v46  ;;  %1228 = vmatpush.msra.mxu1 %v1134_v37 }
 0x4ed   :  { %v1191_v1 = vpop.f32.mrf.mxu3 }
 0x4ee   :  { %1247 = vmatpush.msra.mxu2 %v1166_v48  ;;  %1229 = vmatpush.msra.mxu1 %v1131_v47  ;;  %v1254_v4 = vadd.f32 %v1191_v1, %v1609_v63 }
 0x4ef   :  { %1349 = vmatmul.msk.f32.vlgmr.msra.gmra.mxu1 %vm27_vm0, %v262_v33 }
 0x4f0   :  { %1248 = vmatpush.msra.mxu2 %v1163_v49 }
 0x4f2   :  { %1249 = vmatpush.msra.mxu2 %v1160_v51 }
 0x4f3   :  { %1350 = vmatmul.msk.f32.vlgmr.msra.gmra.mxu2 %vm27_vm0, %v262_v33 }
 0x56c   :  { %v1231_v2 = vpop.f32.mrf.mxu1 }
 0x56d   :  { %v1256_v3 = vadd.f32 %v1231_v2, %v1605_v61 }
 0x56f   :  { %v1260_v5 = vrot.slane %v1256_v3, 4 }
 0x571   :  { %v1264_v6 = vsel %vm549_vm12, %v1254_v4, %v1260_v5 }
 0x572   :  { %1266 = vst [vmem:[%s1740_s5] sm:$0xff] %v1264_v6 }
 0x576   :  { %v1251_v8 = vpop.f32.mrf.mxu2 }
 0x577   :  { %v1257_v9 = vadd.f32 %v1251_v8, %v1611_v0 }
 0x579   :  { %v1261_v11 = vrot.slane %v1257_v9, 4 }
 0x57b   :  { %v1265_v12 = vsel %vm549_vm12, %v1255_v10, %v1261_v11 }
 0x57c   :  { %1267 = vst [vmem:[%s1740_s5 + $0x8] sm:$0xff] %v1265_v12 }

</bundles_post_ra>
